<compile_context>
chip_gen: v5e
topology: v5e:2x2
jax: 0.10.0
libtpu: 0.0.40
codegen_flags: <defaults>
</compile_context>

<pallas_src>
import functools

import jax
import jax.numpy as jnp
from jax.experimental import pallas as pl
from jax.experimental.pallas import tpu as pltpu

_LANES = 128


def _round_up(a, b):
    return ((a + b - 1) // b) * b


def _target_block_bytes():
    # v7x HBM is ~2.3x faster per TC than v6e, so the fixed ~0.35 us/step
    # pipeline overhead needs bigger blocks to amortize.  4 MiB blocks
    # double-buffer (in+out) to 16 MiB, inside v7x's 32 MiB default scoped
    # VMEM.  Everything else uses 2 MiB blocks (8 MiB double-buffered, inside
    # v5e's 16 MiB default scoped VMEM).
    try:
        kind = jax.devices()[0].device_kind.lower()
    except Exception:
        kind = ""
    if "v7" in kind:
        return 4 << 20
    return 2 << 20


def _rational_kernel(degree_p, n_q, use_newton, cp_ref, cq_ref, x_ref, o_ref):
    """Evaluate P(x)/Q(x) on one [block_rows, 128] tile.

    cp_ref: SMEM, shape (degree_p + 1,)  -- numerator coeffs, highest degree first.
    cq_ref: SMEM, shape (n_q,)           -- denominator coeffs of x^n_q .. x^1,
            highest degree first (a single zero if degree_q == 0).
    """
    x = x_ref[...].astype(jnp.float32)

    # Numerator via Horner; start from the scalar coefficient and let the
    # first FMA broadcast it (no full-tile materialization).
    num = cp_ref[0]
    for i in range(1, degree_p + 1):
        num = num * x + cp_ref[i]

    # Denominator: x * Horner(coeffs_q) + 1 (== 1 exactly when degree_q == 0).
    den = cq_ref[0]
    for i in range(1, n_q):
        den = den * x + cq_ref[i]
    den = den * x + 1.0

    # Approximate reciprocal on the EUP; one Newton step only when the output
    # dtype actually needs f32-level precision (skipped for bf16/f16 to keep
    # the VALU slot budget low on v7x).
    r = pl.reciprocal(den, approx=True)
    if use_newton:
        r = r * (2.0 - den * r)

    o_ref[...] = (num * r).astype(o_ref.dtype)


def rational_function(x, coeffs_p, coeffs_q):
    """Pallas-backed RationalFunction.forward for arbitrary-shape x."""
    degree_p = int(coeffs_p.shape[0]) - 1
    degree_q = int(coeffs_q.shape[0])

    orig_shape = x.shape
    orig_dtype = x.dtype
    total = int(x.size)
    if total == 0:  # empty-input guard
        return x

    itemsize = jnp.dtype(orig_dtype).itemsize
    lane_pad = (-total) % _LANES
    m_raw = (total + lane_pad) // _LANES  # rows of the lane-dense [m_raw, 128] slab

    # Block selection: ~2 MiB (4 MiB on v7x) per block; at least 2 blocks when
    # possible so both v7x TensorCores get work; partial last block is fine.
    max_block_rows = max(8, (_target_block_bytes() // (_LANES * itemsize)) // 8 * 8)
    if m_raw <= 8:
        block_rows = m_raw  # single block equal to the full array dims
    else:
        block_rows = min(max_block_rows, _round_up(pl.cdiv(m_raw, 2), 8))
    grid = pl.cdiv(m_raw, block_rows)

    x_flat = x.reshape(-1)
    if lane_pad:
        # Padding is harmless: den(0) == 1, so padded lanes stay finite and
        # are sliced off below.
        # TODO(synk): replace this tiny pad + tail slice with a manual-DMA
        # tail path (memory_space=pl.ANY) to avoid the extra HBM pass for
        # non-128-aligned element counts.
        x_flat = jnp.pad(x_flat, (0, lane_pad))
    x2d = x_flat.reshape(m_raw, _LANES)

    cp = coeffs_p.astype(jnp.float32)
    if degree_q == 0:
        cq = jnp.zeros((1,), dtype=jnp.float32)  # den == 0*x + 1 == 1
    else:
        cq = coeffs_q.astype(jnp.float32)
    n_q = max(degree_q, 1)

    use_newton = itemsize >= 4

    flops_per_elem = 2 * degree_p + 2 * n_q + (3 if use_newton else 0) + 1
    cost = pl.CostEstimate(
        flops=flops_per_elem * total,
        transcendentals=total,
        bytes_accessed=2 * total * itemsize,
    )

    kernel = functools.partial(_rational_kernel, degree_p, n_q, use_newton)

    out2d = pl.pallas_call(
        kernel,
        out_shape=jax.ShapeDtypeStruct((m_raw, _LANES), orig_dtype),
        grid=(grid,),
        in_specs=[
            pl.BlockSpec(memory_space=pltpu.MemorySpace.SMEM),      # coeffs_p
            pl.BlockSpec(memory_space=pltpu.MemorySpace.SMEM),      # coeffs_q
            pl.BlockSpec((block_rows, _LANES), lambda i: (i, 0)),   # x tile
        ],
        out_specs=pl.BlockSpec((block_rows, _LANES), lambda i: (i, 0)),
        compiler_params=pltpu.CompilerParams(
            dimension_semantics=("parallel",),
        ),
        cost_estimate=cost,
    )(cp, cq, x2d)

    if lane_pad:
        return out2d.reshape(-1)[:total].reshape(orig_shape)
    return out2d.reshape(orig_shape)  # free bitcast reshape; no extra HBM pass


def rational_function_ref(x, coeffs_p, coeffs_q):
    """Pure-JAX reference mirroring the PyTorch forward exactly."""
    xf = x.astype(jnp.float32)
    num = sum(coeffs_p[-i - 1] * xf**i for i in range(coeffs_p.shape[0]))
    den = sum(coeffs_q[-i - 1] * xf ** (i + 1) for i in range(coeffs_q.shape[0])) + 1.0
    return (num / den).astype(x.dtype)


if __name__ == "__main__":
    key = jax.random.PRNGKey(0)
    k_x, k_p, k_q, k_x2 = jax.random.split(key, 4)

    # Module config: degree_p=3, degree_q=2 (torch.rand-like init in [0, 1)).
    degree_p, degree_q = 3, 2
    coeffs_p = jax.random.uniform(k_p, (degree_p + 1,), dtype=jnp.float32)
    coeffs_q = jax.random.uniform(k_q, (degree_q,), dtype=jnp.float32)

    # Small NCHW-style input: batch=2, channels=4, spatial=16x16 (128-aligned).
    x = jax.random.normal(k_x, (2, 4, 16, 16), dtype=jnp.float32)
    out = jax.block_until_ready(rational_function(x, coeffs_p, coeffs_q))
    ref = rational_function_ref(x, coeffs_p, coeffs_q)
    assert out.shape == x.shape and out.dtype == x.dtype
    assert jnp.allclose(out, ref, rtol=1e-5, atol=1e-5), "mismatch vs reference"

    # Non-128-aligned shape: exercises the tiny lane pad + partial row block.
    x_odd = jax.random.normal(k_x2, (3, 5, 17, 19), dtype=jnp.float32)
    out_odd = jax.block_until_ready(rational_function(x_odd, coeffs_p, coeffs_q))
    ref_odd = rational_function_ref(x_odd, coeffs_p, coeffs_q)
    assert out_odd.shape == x_odd.shape
    assert jnp.allclose(out_odd, ref_odd, rtol=1e-5, atol=1e-5), "mismatch (padded path)"

    # Tiny (<128 element) single-block path.
    x_tiny = jax.random.normal(jax.random.fold_in(k_x2, 1), (3, 7), dtype=jnp.float32)
    out_tiny = jax.block_until_ready(rational_function(x_tiny, coeffs_p, coeffs_q))
    ref_tiny = rational_function_ref(x_tiny, coeffs_p, coeffs_q)
    assert out_tiny.shape == x_tiny.shape
    assert jnp.allclose(out_tiny, ref_tiny, rtol=1e-5, atol=1e-5), "mismatch (tiny path)"

    # bf16 streaming smoke test (half the HBM bytes; Newton refinement skipped).
    x_bf16 = x.astype(jnp.bfloat16)
    out_bf16 = jax.block_until_ready(rational_function(x_bf16, coeffs_p, coeffs_q))
    assert out_bf16.shape == x_bf16.shape and out_bf16.dtype == jnp.bfloat16

    print("KERNEL_OK")
</pallas_src>

<mosaic_0001>
module attributes {stable_mosaic.version = 11 : i64} {
  func.func @_rational_kernel(%arg0: i32, %arg1: memref<4xf32, #tpu.memory_space<smem>>, %arg2: memref<2xf32, #tpu.memory_space<smem>>, %arg3: memref<8x128xf32, #tpu.memory_space<vmem>>, %arg4: memref<8x128xf32, #tpu.memory_space<vmem>>) attributes {dimension_semantics = [#tpu.dimension_semantics<parallel>], iteration_bounds = array<i64: 2>, scalar_prefetch = 0 : i64, scratch_operands = 0 : i64, tpu.core_type = #tpu.core_type<tc>, window_params = [{transform_indices = @transform_0, window_bounds = array<i64: 4>}, {transform_indices = @transform_1, window_bounds = array<i64: 2>}, {transform_indices = @transform_2, window_bounds = array<i64: 8, 128>}, {transform_indices = @transform_3, window_bounds = array<i64: 8, 128>}]} {
    %c0 = arith.constant 0 : index
    %c0_0 = arith.constant 0 : index
    %0 = vector.load %arg3[%c0, %c0_0] : memref<8x128xf32, #tpu.memory_space<vmem>>, vector<8x128xf32>
    %c0_1 = arith.constant 0 : index
    %1 = memref.load %arg1[%c0_1] : memref<4xf32, #tpu.memory_space<smem>>
    %2 = vector.broadcast %1 : f32 to vector<8x128xf32>
    %3 = arith.mulf %2, %0 : vector<8x128xf32>
    %c1 = arith.constant 1 : index
    %4 = memref.load %arg1[%c1] : memref<4xf32, #tpu.memory_space<smem>>
    %5 = vector.broadcast %4 : f32 to vector<8x128xf32>
    %6 = arith.addf %3, %5 : vector<8x128xf32>
    %7 = arith.mulf %6, %0 : vector<8x128xf32>
    %c2 = arith.constant 2 : index
    %8 = memref.load %arg1[%c2] : memref<4xf32, #tpu.memory_space<smem>>
    %9 = vector.broadcast %8 : f32 to vector<8x128xf32>
    %10 = arith.addf %7, %9 : vector<8x128xf32>
    %11 = arith.mulf %10, %0 : vector<8x128xf32>
    %c3 = arith.constant 3 : index
    %12 = memref.load %arg1[%c3] : memref<4xf32, #tpu.memory_space<smem>>
    %13 = vector.broadcast %12 : f32 to vector<8x128xf32>
    %14 = arith.addf %11, %13 : vector<8x128xf32>
    %c0_2 = arith.constant 0 : index
    %15 = memref.load %arg2[%c0_2] : memref<2xf32, #tpu.memory_space<smem>>
    %16 = vector.broadcast %15 : f32 to vector<8x128xf32>
    %17 = arith.mulf %16, %0 : vector<8x128xf32>
    %c1_3 = arith.constant 1 : index
    %18 = memref.load %arg2[%c1_3] : memref<2xf32, #tpu.memory_space<smem>>
    %19 = vector.broadcast %18 : f32 to vector<8x128xf32>
    %20 = arith.addf %17, %19 : vector<8x128xf32>
    %21 = arith.mulf %20, %0 : vector<8x128xf32>
    %cst = arith.constant 1.000000e+00 : f32
    %22 = vector.broadcast %cst : f32 to vector<8x128xf32>
    %23 = arith.addf %21, %22 : vector<8x128xf32>
    %24 = tpu.reciprocal %23 {approx = true} : vector<8x128xf32> -> vector<8x128xf32>
    %25 = arith.mulf %23, %24 : vector<8x128xf32>
    %cst_4 = arith.constant 2.000000e+00 : f32
    %26 = vector.broadcast %cst_4 : f32 to vector<8x128xf32>
    %27 = arith.subf %26, %25 : vector<8x128xf32>
    %28 = arith.mulf %24, %27 : vector<8x128xf32>
    %29 = arith.mulf %14, %28 : vector<8x128xf32>
    %c0_5 = arith.constant 0 : index
    %c0_6 = arith.constant 0 : index
    %30 = vector.load %arg4[%c0_5, %c0_6] : memref<8x128xf32, #tpu.memory_space<vmem>>, vector<8x128xf32>
    tpu.vector_store %arg4[%c0_5, %c0_6], %29 {strides = array<i32>} : memref<8x128xf32, #tpu.memory_space<vmem>>, vector<8x128xf32>,
    return
  }
  func.func @transform_0(%arg0: i32) -> i32 {
    %c0_i32 = arith.constant 0 : i32
    %c0_i32_0 = arith.constant 0 : i32
    return %c0_i32 : i32
  }
  func.func @transform_1(%arg0: i32) -> i32 {
    %c0_i32 = arith.constant 0 : i32
    %c0_i32_0 = arith.constant 0 : i32
    return %c0_i32 : i32
  }
  func.func @transform_2(%arg0: i32) -> (i32, i32) {
    %c0_i32 = arith.constant 0 : i32
    %c0_i32_0 = arith.constant 0 : i32
    return %arg0, %c0_i32 : i32, i32
  }
  func.func @transform_3(%arg0: i32) -> (i32, i32) {
    %c0_i32 = arith.constant 0 : i32
    %c0_i32_0 = arith.constant 0 : i32
    return %arg0, %c0_i32 : i32, i32
  }
}

</mosaic_0001>

<bundles_post_ra>
// kernel: tpu_custom_call.1
= control target key start
LH: loop header
LB: loop body
LE: loop exit
PB: predicated region body
PF: predicated region fallthrough
CT: control target
= control target key end

     0   :  { %8 = vsyncpa [#allocation5], 0  ;;  %s748_s0 = inlined_call_operand.hbm [shape: f32[4], index: 0, kind: input, shape index: {}]   ;;  %s749_s1 = inlined_call_operand.hbm [shape: f32[2], index: 1, kind: input, shape index: {}]   ;;  %s750_s2 = inlined_call_operand.hbm [shape: f32[16,128], index: 2, kind: input, shape index: {}]   ;;  %s751_s3 = inlined_call_operand.hbm [shape: f32[16,128], index: 3, kind: output, shape index: {}]  }
   0x1   :  { %9 = vsyncpa [#allocation7], 0 }
   0x2   :  { %10 = vsyncpa [#allocation3], 0 }
   0x3   :  { %12 = vsyncpa [#allocation3 + $0x1], 0 }
   0x4   :  { %13 = vsyncpa [#allocation4], 0 }
   0x5   :  { %15 = vsyncpa [#allocation4 + $0x1], 0  ;;  %s599_s12 = smov 0   ;;  %s601_s13 = smov 0  }
   0x6   :  { %s603_s14 = smov 0   ;;  %s605_s15 = smov 0  }
   0x7 LB: > { %s620_s16 = sadd.s32 4294967295, %s575_s15   ;;  %s352_s17 = sadd.s32 4294967294, %s575_s15   ;;  %s575_s15 = sphi %s605_s15, %s761_s15   ;;  %s571_s14 = sphi %s603_s14, %s760_s14   ;;  %s567_s13 = sphi %s601_s13, %s759_s13   ;;  %s563_s12 = sphi %s599_s12, %s758_s12  }
   0x8   : > { %p83_p0 = scmp.ne.s32.totalorder %s567_s13, %s563_s12  ;;  %p84_p1 = scmp.eq.s32.totalorder %s620_s16, 0 }
   0x9   : > { %p107_p2 = scmp.eq.s32.totalorder %s620_s16, 1  ;;  %p113_p3 = scmp.eq.s32.totalorder %s352_s17, 1 }
   0xa   : > { %p629_p4 = por %p84_p1, %p83_p0  ;;  %p353_p5 = scmp.ge.s32.totalorder %s575_s15, 1 }
   0xb   : > { %p634_p6 = por %p113_p3, %p83_p0  ;;  %p120_p7 = scmp.lt.s32.totalorder %s575_s15, 3 }
   0xc   : > { %s132_s22 = sshll.u32 %s748_s0, 4  ;;  %s142_s26 = sshll.u32 %s749_s1, 4  ;;  %s133_s22 = int_to_ptr.hbm [resolvable:$true] %s132_s22  ;;  %s143_s26 = int_to_ptr.hbm [resolvable:$true] %s142_s26 }
   0xd   : > { %p642_p8 = pnand %p353_p5, %p120_p7  ;;  %s655_s27 = sadd.s32 1, %s575_s15  }
   0xe   : > { %s67_s28 = ssub.s32 %s575_s15, %s655_s27  ;;  %s577_s29 = smov [#allocation2]  }
   0xf   : > { %p384_p10 = pneg %p642_p8  ;;  %s578_s30 = smov [#allocation6]  }
  0x10   : > { %p68_p12 = scmp.eq.s32.totalorder %s67_s28, 0  ;;  %s70_s4 = sadd.s32 1, %s571_s14 }
  0x11   : > { %p385_p11 = pnand %p384_p10, %p84_p1  ;;  %p77_p13 = scmp.ne.s32.totalorder %s571_s14, %s567_s13 }
  0x12   : > { %p78_p0 = scmp.eq.s32.totalorder %s575_s15, 0  ;;  %p401_p7 = scmp.lt.s32.totalorder %s575_s15, 2 }
  0x13   : > { %387 = dma.hbm_to_smem (!%p385_p11), %s133_s22, 16, %s577_s29, [#allocation5]  }
  0x14   : > { %390 = dma.hbm_to_smem (!%p385_p11), %s143_s26, 16, %s578_s30, [#allocation7]  }
  0x15   : > { %s664_s5 = scalar_select %p68_p12, %s571_s14, %s70_s4  }
  0x16   : > { %p79_p3 = por %p78_p0, %p77_p13  ;;  %p668_p5 = por %p107_p2, %p77_p13 }
  0x17   : > { %s153_s7 = sand.u32 1, %s571_s14   ;;  %s358_s9 = sshll.u32 %s575_s15, 3 }
  0x18   : > { %s357_s8 = sshll.u32 %s153_s7, 3  ;;  %s161_s17 = scalar_lea.hbm %s750_s2, %s358_s9 }
  0x19   : > { %s157_s20 = scalar_lea.vmem [#allocation8], %s357_s8  ;;  %s163_s22 = sshll.u32 %s161_s17, 4  ;;  %s164_s22 = int_to_ptr.hbm [resolvable:$true] %s163_s22 }
  0x1a   : > { %s165_s21 = sshll.u32 %s157_s20, 4  ;;  %p678_p10 = pnand %p401_p7, %p79_p3  ;;  %s166_s21 = int_to_ptr.vmem [resolvable:$true] %s165_s21 }
  0x1b   : > { %s154_s25 = scalar_lea.sflag [#allocation3], %s153_s7  ;;  %s471_s26 = sshra.s32 %s164_s22, 4  ;;  %s472_s26 = int_to_ptr.hbm [resolvable:$true] %s471_s26 }
  0x1c   : > { %s473_s28 = scalar_lea.hbm %s472_s26, 8  ;;  %p475_p11 = pneg %p678_p10 }
  0x1d   : > { %p474_p2 = scmp.ne.s32.totalorder %s472_s26, %s473_s28  ;;  %s478_s4 = scalar_lea.hbm %s750_s2, 16 }
  0x1e   : > { %p479_p0 = scmp.lt.s32.totalorder %s472_s26, %s750_s2  ;;  %p480_p3 = scmp.lt.s32.totalorder %s478_s4, %s473_s28 }
  0x1f   : > { %p476_p12 = pnand %p475_p11, %p474_p2 }
  0x20   : > { %p481_p7 = por %p480_p3, %p479_p0 }
  0x21   : > { %p477_p13 = pneg %p476_p12 }
  0x23   : > { %p482_p9 = pnand %p481_p7, %p477_p13 }
  0x25   : > { %485 = shalt.err (!%p482_p9)
}
  0x26   : > { %394 = dma.hbm_to_vmem [thread:$0]  (!%p678_p10), %s164_s22, 128, %s166_s21, %s154_s25  }
  0x27   : > { %174 = sbr.rel (%p642_p8) target bundleno = 88 (0x58), region = 32 }
  0x2c   : > { %546 = dma.done.wait (%p84_p1), [#allocation5], 16  }
  0x2d   : > { %548 = vsyncadd (%p84_p1), [#allocation5], 4294967280 }
  0x2e   : > { %550 = dma.done.wait (%p84_p1), [#allocation7], 16  }
  0x2f   : > { %552 = vsyncadd (%p84_p1), [#allocation7], 4294967280  ;;  %s703_s7 = sand.u32 1, %s567_s13  }
  0x30   : > { %s362_s23 = sshll.u32 %s703_s7, 3  ;;  %s187_s10 = scalar_lea.sflag [#allocation3], %s703_s7 }
  0x31   : > { %s190_s11 = scalar_lea.vmem [#allocation8], %s362_s23 }
  0x32   : > { %554 = dma.done.wait (%p629_p4), %s187_s10, 128  }
  0x33   : > { %556 = vsyncadd (%p629_p4), %s187_s10, 4294967168 }
  0x34   : > { %196 = sfence }
  0x35   : > { %s216_s17 = sld [smem:[#allocation2]]  ;;  %v215_v1 = vld [vmem:[%s190_s11] sm:$0xff]  ;;  %s369_s25 = sshll.u32 %s620_s16, 3 }
  0x36   : > { %s364_s20 = sld [smem:[#allocation2 + $0x1]]  ;;  %s255_s29 = scalar_lea.hbm %s751_s3, %s369_s25 }
  0x37   : > { %s230_s21 = sld [smem:[#allocation6]]  ;;  %s214_s30 = scalar_lea.vmem [#allocation9], %s362_s23 }
  0x38   : > { %s367_s22 = sld [smem:[#allocation6 + $0x1]]  ;;  %s257_s4 = sshll.u32 %s214_s30, 4  ;;  %s258_s4 = int_to_ptr.vmem [resolvable:$true] %s257_s4 }
  0x39   : > { %s365_s24 = sld [smem:[#allocation2 + $0x2]]  ;;  %s259_s8 = sshll.u32 %s255_s29, 4  ;;  %s260_s8 = int_to_ptr.hbm [resolvable:$true] %s259_s8 }
  0x3a   : > { %s366_s18 = sld [smem:[#allocation2 + $0x3]]  ;;  %s245_s16 = scalar_lea.sflag [#allocation4], %s703_s7 }
  0x3b   : > { %v217_v0 = vstv %s216_s17  ;;  %s515_s9 = sshra.s32 %s260_s8, 4  ;;  %s516_s9 = int_to_ptr.hbm [resolvable:$true] %s515_s9 }
  0x3c   : > { %v218_v2 = vmul.f32 %v217_v0, %v215_v1  ;;  %v220_v3 = vstv %s364_s20  ;;  %s517_s10 = scalar_lea.hbm %s516_s9, 8  ;;  %s521_s20 = scalar_lea.hbm %s751_s3, 16 }
  0x3d   : > { %v231_v4 = vstv %s230_s21  ;;  %p518_p1 = scmp.ne.s32.totalorder %s516_s9, %s517_s10  ;;  %p522_p9 = scmp.lt.s32.totalorder %s516_s9, %s751_s3 }
  0x3e   : > { %v232_v5 = vmul.f32 %v231_v4, %v215_v1  ;;  %v234_v6 = vstv %s367_s22  ;;  %v221_v7 = vadd.f32 %v220_v3, %v218_v2  ;;  %p523_p10 = scmp.lt.s32.totalorder %s521_s20, %s517_s10 }
  0x3f   : > { %v224_v11 = vstv %s365_s24  ;;  %p519_p4 = pnand %p518_p1, %p668_p5 }
  0x40   : > { %v235_v8 = vadd.f32 %v234_v6, %v232_v5  ;;  %v222_v10 = vmul.f32 %v221_v7, %v215_v1  ;;  %v228_v16 = vstv %s366_s18  ;;  %p524_p2 = por %p523_p10, %p522_p9 }
  0x41   : > { %p520_p8 = pneg %p519_p4 }
  0x42   : > { %v236_v9 = vmul.f32 %v235_v8, %v215_v1  ;;  %v225_v13 = vadd.f32 %v224_v11, %v222_v10 }
  0x43   : > { %p525_p11 = pnand %p524_p2, %p520_p8 }
  0x44   : > { %v237_v12 = vadd.f32 1.0, %v236_v9  ;;  %v226_v14 = vmul.f32 %v225_v13, %v215_v1 }
  0x46   : > { %439 = vrcp.f32 %v237_v12  ;;  %v229_v18 = vadd.f32 %v228_v16, %v226_v14 }
  0x4c   : > { %v440_v15 = vpop.eup %439 }
  0x4d   : > { %v239_v17 = vmul.f32 %v440_v15, %v237_v12 }
  0x4f   : > { %v240_v19 = vsub.f32 2.0, %v239_v17 }
  0x51   : > { %v241_v20 = vmul.f32 %v440_v15, %v240_v19 }
  0x53   : > { %v242_v21 = vmul.f32 %v241_v20, %v229_v18 }
  0x55   : > { %243 = vst [vmem:[%s214_s30] sm:$0xff] %v242_v21 }
  0x56   : > { %528 = shalt.err (!%p525_p11)
}
  0x57   : > { %382 = dma.vmem_to_hbm [thread:$0]  (%p668_p5), %s258_s4, 128, %s260_s8, %s245_s16  }
  0x58 PF: > { %s271_s7 = sand.u32 1, %s563_s12   ;;  %p757_p12 = scmp.ge.s32.totalorder %s575_s15, 2 }
  0x59   : > { %s272_s22 = scalar_lea.sflag [#allocation4], %s271_s7 }
  0x5a   : > { %p396_p13 = pnand %p757_p12, %p634_p6 }
  0x5c   : > { %p397_p0 = pneg %p396_p13 }
  0x5e   : > { %558 = dma.done.wait (%p397_p0), %s272_s22, 128  }
  0x5f   : > { %560 = vsyncadd (%p397_p0), %s272_s22, 4294967168  ;;  %p18_p3 = scmp.ge.s32.totalorder %s655_s27, 4   ;;  %s758_s12 = smov %s567_s13 }
  0x60   : > { %s759_s13 = smov %s571_s14  ;;  %s760_s14 = smov %s664_s5 }
  0x61   : > { %s761_s15 = smov %s655_s27  ;;  %20 = sbr.rel (!%p18_p3) target bundleno = 7 (0x7), region = 86 }
  0x66   :  { %278 = vsyncpa [#allocation3], 1 }
  0x67   :  { %280 = vsyncpa [#allocation3 + $0x1], 1 }
  0x68   :  { %281 = vsyncpa [#allocation4], 1 }
  0x69   :  { %283 = vsyncpa [#allocation4 + $0x1], 1 }
  0x6a   :  { %284 = vsyncpa [#allocation5], 1 }
  0x6b   :  { %286 = vsyncpa [#allocation5 + $0x1], 1 }
  0x6c   :  { %287 = vsyncpa [#allocation7], 1 }

</bundles_post_ra>
